<compile_context>
chip_gen: v7x
topology: tpu7x:2x2x1
jax: 0.10.0
libtpu: 0.0.40
codegen_flags: <defaults>
</compile_context>

<pallas_src>
import functools

import jax
import jax.numpy as jnp
from jax.experimental import pallas as pl
from jax.experimental.pallas import tpu as pltpu

EPS = 1e-6


def _is_v5_device():
    try:
        return "v5" in jax.devices()[0].device_kind.lower()
    except Exception:
        return False


# v5e has no bf16 VALU; keep the f32 epilogue there.
_BF16_NATIVE_EPILOGUE_OK = not _is_v5_device()


# --------------------------------------------------------------------------
# Main (single-call) kernel: one (TR, D) row block per grid step.
# --------------------------------------------------------------------------
def _layernorm_kernel(alpha_ref, bias_ref, x_ref, o_ref, *, bf16_epilogue):
    # alpha_ref, bias_ref: SMEM scalars of shape (1,)
    # x_ref, o_ref: VMEM tiles of shape (TR, D)
    x_nat = x_ref[...]
    x = x_nat.astype(jnp.float32)
    d = x.shape[-1]

    # Single pass: sum(x) and sum(x*x) together (f32 accumulation).
    s = jnp.sum(x, axis=-1, keepdims=True)
    sq = jnp.sum(x * x, axis=-1, keepdims=True)
    mean = s * (1.0 / d)
    # PyTorch x.std(dim=-1) uses the unbiased estimator (correction = 1).
    var = jnp.maximum((sq - s * mean) / (d - 1), 0.0)
    std = jnp.sqrt(var)

    # eps is added to std (not var), matching the PyTorch reference.
    # approx=False -> exact divide (approx=True EUP path only if profiling
    # shows the VPU exposed and the tolerance allows it).
    inv = pl.reciprocal(std + EPS, approx=False)
    alpha = alpha_ref[0]
    bias = bias_ref[0]
    scale = alpha * inv                    # (TR, 1)
    shift = bias - mean * scale            # (TR, 1)

    if bf16_epilogue:
        # Native-dtype FMA + store: halves vreg pressure / VPU op count on
        # v6e/v7x bf16 streams.
        o_ref[...] = (x_nat * scale.astype(x_nat.dtype)
                      + shift.astype(x_nat.dtype)).astype(o_ref.dtype)
    else:
        o_ref[...] = (x * scale + shift).astype(o_ref.dtype)


def _layer_norm_rows(x2, alpha, bias, *, max_block_bytes, bf16_epilogue):
    R, D = x2.shape
    itemsize = jnp.dtype(x2.dtype).itemsize
    sublane = 8 * max(1, 4 // itemsize)
    row_bytes = D * itemsize

    # Size the row tile to ~max_block_bytes (default 4 MiB): (in + out) x 2
    # double-buffers = 4 x block stays well under the per-core VMEM on all gens.
    budget_rows = max(sublane, max_block_bytes // max(1, row_bytes))
    tr = max(sublane, (budget_rows // sublane) * sublane)

    r_ceil = ((R + sublane - 1) // sublane) * sublane
    # Megacore (v7x): keep >= ~8 grid steps when there is enough work so the
    # "parallel" row axis can be sharded across both TensorCores.
    min_steps = 8
    if r_ceil >= min_steps * sublane:
        cap = max(sublane, ((r_ceil // min_steps) // sublane) * sublane)
        tr = min(tr, cap)
    tr = min(tr, r_ceil)

    grid = (pl.cdiv(R, tr),)  # ragged last block is masked by Pallas
    block_bytes = tr * D * itemsize
    vmem_limit = int(min(32 * 1024 * 1024, max(4 * 1024 * 1024, 6 * block_bytes)))

    kernel = functools.partial(_layernorm_kernel, bf16_epilogue=bf16_epilogue)
    return pl.pallas_call(
        kernel,
        out_shape=jax.ShapeDtypeStruct((R, D), x2.dtype),
        grid_spec=pltpu.PrefetchScalarGridSpec(
            num_scalar_prefetch=0,
            grid=grid,
            in_specs=[
                pl.BlockSpec(memory_space=pltpu.SMEM),      # alpha, shape (1,)
                pl.BlockSpec(memory_space=pltpu.SMEM),      # bias,  shape (1,)
                pl.BlockSpec((tr, D), lambda i: (i, 0)),    # x rows
            ],
            out_specs=pl.BlockSpec((tr, D), lambda i: (i, 0)),
        ),
        compiler_params=pltpu.CompilerParams(
            dimension_semantics=("parallel",),
            vmem_limit_bytes=vmem_limit,
        ),
        cost_estimate=pl.CostEstimate(
            flops=5 * R * D,
            transcendentals=2 * R,
            bytes_accessed=2 * R * D * itemsize,
        ),
    )(alpha, bias, x2)


# --------------------------------------------------------------------------
# Large-D fallback: D-tiled two-pass (stats then apply) so a row block never
# has to hold the full feature dimension in VMEM (v7x: 64 MiB per TC).
# --------------------------------------------------------------------------
def _stats_kernel(x_ref, sums_ref, s_acc, sq_acc, *, d, td):
    j = pl.program_id(1)

    @pl.when(j == 0)
    def _():
        s_acc[...] = jnp.zeros_like(s_acc)
        sq_acc[...] = jnp.zeros_like(sq_acc)

    x = x_ref[...].astype(jnp.float32)
    if d % td != 0:
        # Mask the OOB columns of the ragged last D tile out of the reduction.
        col = jax.lax.broadcasted_iota(jnp.int32, x.shape, 1) + j * td
        x = jnp.where(col < d, x, 0.0)
    s_acc[...] += jnp.sum(x, axis=-1, keepdims=True)
    sq_acc[...] += jnp.sum(x * x, axis=-1, keepdims=True)

    @pl.when(j == pl.num_programs(1) - 1)
    def _():
        sums_ref[:, 0:1] = s_acc[...]
        sums_ref[:, 1:2] = sq_acc[...]


def _apply_kernel(alpha_ref, bias_ref, sums_ref, x_ref, o_ref, *, d, bf16_epilogue):
    s = sums_ref[:, 0:1]
    sq = sums_ref[:, 1:2]
    mean = s * (1.0 / d)
    var = jnp.maximum((sq - s * mean) / (d - 1), 0.0)
    std = jnp.sqrt(var)
    inv = pl.reciprocal(std + EPS, approx=False)
    alpha = alpha_ref[0]
    bias = bias_ref[0]
    scale = alpha * inv
    shift = bias - mean * scale
    x_nat = x_ref[...]
    if bf16_epilogue:
        o_ref[...] = (x_nat * scale.astype(x_nat.dtype)
                      + shift.astype(x_nat.dtype)).astype(o_ref.dtype)
    else:
        o_ref[...] = (x_nat.astype(jnp.float32) * scale + shift).astype(o_ref.dtype)


def _layer_norm_rows_large_d(x2, alpha, bias, *, max_block_bytes, bf16_epilogue):
    R, D = x2.shape
    itemsize = jnp.dtype(x2.dtype).itemsize
    sublane = 8 * max(1, 4 // itemsize)
    lanes = 128

    tr = sublane
    td_budget = max(lanes, (max_block_bytes // (tr * itemsize)) // lanes * lanes)
    d_ceil = ((D + lanes - 1) // lanes) * lanes
    td = min(td_budget, d_ceil)

    grid = (pl.cdiv(R, tr), pl.cdiv(D, td))
    block_bytes = tr * td * itemsize
    vmem_limit = int(min(32 * 1024 * 1024, max(4 * 1024 * 1024, 6 * block_bytes)))

    sums = pl.pallas_call(
        functools.partial(_stats_kernel, d=D, td=td),
        out_shape=jax.ShapeDtypeStruct((R, 2), jnp.float32),
        grid_spec=pltpu.PrefetchScalarGridSpec(
            num_scalar_prefetch=0,
            grid=grid,
            in_specs=[pl.BlockSpec((tr, td), lambda i, j: (i, j))],
            out_specs=pl.BlockSpec((tr, 2), lambda i, j: (i, 0)),
            scratch_shapes=[pltpu.VMEM((tr, 1), jnp.float32),
                            pltpu.VMEM((tr, 1), jnp.float32)],
        ),
        compiler_params=pltpu.CompilerParams(
            dimension_semantics=("parallel", "arbitrary"),
            vmem_limit_bytes=vmem_limit,
        ),
    )(x2)

    out = pl.pallas_call(
        functools.partial(_apply_kernel, d=D, bf16_epilogue=bf16_epilogue),
        out_shape=jax.ShapeDtypeStruct((R, D), x2.dtype),
        grid_spec=pltpu.PrefetchScalarGridSpec(
            num_scalar_prefetch=0,
            grid=grid,
            in_specs=[
                pl.BlockSpec(memory_space=pltpu.SMEM),          # alpha
                pl.BlockSpec(memory_space=pltpu.SMEM),          # bias
                pl.BlockSpec((tr, 2), lambda i, j: (i, 0)),     # per-row sums
                pl.BlockSpec((tr, td), lambda i, j: (i, j)),    # x tile
            ],
            out_specs=pl.BlockSpec((tr, td), lambda i, j: (i, j)),
        ),
        compiler_params=pltpu.CompilerParams(
            dimension_semantics=("parallel", "arbitrary"),
            vmem_limit_bytes=vmem_limit,
        ),
    )(alpha, bias, sums, x2)
    return out


# --------------------------------------------------------------------------
# Public wrappers
# --------------------------------------------------------------------------
def layer_norm_pallas(x, alpha, bias, *, max_block_bytes=4 * 1024 * 1024):
    """LayerNormalization(x) with scalar alpha / bias, matching the PyTorch ref.

    x: (..., D).  Normalization is over the last dim.  No wrapper-side padding;
    ragged last blocks are handled by Pallas masking.
    """
    orig_shape = x.shape
    D = orig_shape[-1]
    R = 1
    for dim in orig_shape[:-1]:
        R *= dim
    x2 = x.reshape(R, D)

    itemsize = jnp.dtype(x.dtype).itemsize
    sublane = 8 * max(1, 4 // itemsize)
    bf16_epilogue = (x.dtype == jnp.bfloat16) and _BF16_NATIVE_EPILOGUE_OK

    if sublane * D * itemsize > max_block_bytes and D > 128:
        out2 = _layer_norm_rows_large_d(
            x2, alpha, bias,
            max_block_bytes=max_block_bytes, bf16_epilogue=bf16_epilogue)
    else:
        out2 = _layer_norm_rows(
            x2, alpha, bias,
            max_block_bytes=max_block_bytes, bf16_epilogue=bf16_epilogue)
    return out2.reshape(orig_shape)


layer_norm_pallas_jit = jax.jit(layer_norm_pallas, static_argnames=("max_block_bytes",))


def decoder_forward(x, encoder_output, src_mask, tgt_mask, alpha, bias):
    """Decoder.forward with an empty layer stack: x passes through the (empty)
    list of DecoderBlocks untouched, then through LayerNormalization."""
    del encoder_output, src_mask, tgt_mask  # unused with an empty layer list
    return layer_norm_pallas_jit(x, alpha, bias)


def _reference_layernorm(x, alpha, bias):
    x32 = x.astype(jnp.float32)
    mean = jnp.mean(x32, axis=-1, keepdims=True)
    std = jnp.std(x32, axis=-1, keepdims=True, ddof=1)  # unbiased, like torch
    return (alpha * (x32 - mean) / (std + EPS) + bias).astype(x.dtype)


if __name__ == "__main__":
    key = jax.random.PRNGKey(0)
    k1, k2, k3, k4, k5 = jax.random.split(key, 5)

    batch, tgt_seq, src_seq, d_model = 2, 8, 8, 32

    x = jax.random.normal(k1, (batch, tgt_seq, d_model), dtype=jnp.float32)
    encoder_output = jax.random.normal(k2, (batch, src_seq, d_model), dtype=jnp.float32)
    src_mask = jnp.ones((batch, 1, tgt_seq, src_seq), dtype=jnp.float32)
    tgt_mask = jnp.tril(jnp.ones((tgt_seq, tgt_seq), dtype=jnp.float32))[None, None]

    # LayerNormalization parameters, deterministic, as in __init__:
    alpha = jnp.ones((1,), dtype=jnp.float32)   # nn.Parameter(torch.ones(1))
    bias = jnp.zeros((1,), dtype=jnp.float32)   # nn.Parameter(torch.zeros(1))

    out = decoder_forward(x, encoder_output, src_mask, tgt_mask, alpha, bias)
    out = jax.block_until_ready(out)
    ref = _reference_layernorm(x, alpha[0], bias[0])
    assert out.shape == (batch, tgt_seq, d_model)
    assert jnp.allclose(out, ref, atol=1e-5, rtol=1e-5), "mismatch vs reference"

    # Ragged-row case (R not a multiple of the sublane / tile) + nontrivial params.
    xb = jax.random.normal(k3, (3, 5, d_model), dtype=jnp.float32)
    alpha_b = jnp.full((1,), 1.5, dtype=jnp.float32)
    bias_b = jnp.full((1,), -0.25, dtype=jnp.float32)
    out_b = jax.block_until_ready(layer_norm_pallas_jit(xb, alpha_b, bias_b))
    ref_b = _reference_layernorm(xb, alpha_b[0], bias_b[0])
    assert out_b.shape == xb.shape
    assert jnp.allclose(out_b, ref_b, atol=1e-5, rtol=1e-5), "mismatch (ragged rows)"

    # Force the large-D (D-tiled two-pass) fallback, including the masked
    # ragged last D tile (192 % 128 != 0).
    xc = jax.random.normal(k4, (4, 6, 192), dtype=jnp.float32)
    out_c = jax.block_until_ready(
        layer_norm_pallas_jit(xc, alpha_b, bias_b, max_block_bytes=4096))
    ref_c = _reference_layernorm(xc, alpha_b[0], bias_b[0])
    assert out_c.shape == xc.shape
    assert jnp.allclose(out_c, ref_c, atol=1e-4, rtol=1e-4), "mismatch (large-D path)"

    # bf16 input: f32 reduction, native-dtype epilogue on v6e/v7x (f32 on v5e).
    xd = jax.random.normal(k5, (2, 16, 128), dtype=jnp.float32).astype(jnp.bfloat16)
    out_d = jax.block_until_ready(layer_norm_pallas_jit(xd, alpha, bias))
    ref_d = _reference_layernorm(xd, alpha[0], bias[0])
    err = jnp.max(jnp.abs(out_d.astype(jnp.float32) - ref_d.astype(jnp.float32)))
    assert out_d.shape == xd.shape
    assert float(err) < 8e-2, f"mismatch (bf16), max abs err {float(err)}"

    print("KERNEL_OK")
</pallas_src>

<mosaic_0001>
module attributes {stable_mosaic.version = 11 : i64} {
  func.func @_layernorm_kernel(%arg0: i32, %arg1: memref<1xf32, #tpu.memory_space<smem>>, %arg2: memref<1xf32, #tpu.memory_space<smem>>, %arg3: memref<16x32xf32, #tpu.memory_space<vmem>>, %arg4: memref<16x32xf32, #tpu.memory_space<vmem>>) attributes {dimension_semantics = [#tpu.dimension_semantics<parallel>], iteration_bounds = array<i64: 1>, scalar_prefetch = 0 : i64, scratch_operands = 0 : i64, tpu.core_type = #tpu.core_type<tc>, window_params = [{transform_indices = @transform_0, window_bounds = array<i64: 1>}, {transform_indices = @transform_1, window_bounds = array<i64: 1>}, {transform_indices = @transform_2, window_bounds = array<i64: 16, 32>}, {transform_indices = @transform_3, window_bounds = array<i64: 16, 32>}]} {
    %c0 = arith.constant 0 : index
    %c0_0 = arith.constant 0 : index
    %0 = vector.load %arg3[%c0, %c0_0] : memref<16x32xf32, #tpu.memory_space<vmem>>, vector<16x32xf32>
    %cst = arith.constant dense<0.000000e+00> : vector<16xf32>
    %1 = vector.multi_reduction <add>, %0, %cst [1] : vector<16x32xf32> to vector<16xf32>
    %2 = vector.shape_cast %1 : vector<16xf32> to vector<16x1xf32>
    %3 = arith.mulf %0, %0 : vector<16x32xf32>
    %cst_1 = arith.constant dense<0.000000e+00> : vector<16xf32>
    %4 = vector.multi_reduction <add>, %3, %cst_1 [1] : vector<16x32xf32> to vector<16xf32>
    %5 = vector.shape_cast %4 : vector<16xf32> to vector<16x1xf32>
    %cst_2 = arith.constant 3.125000e-02 : f32
    %6 = vector.broadcast %cst_2 : f32 to vector<16x1xf32>
    %7 = arith.mulf %2, %6 : vector<16x1xf32>
    %8 = arith.mulf %2, %7 : vector<16x1xf32>
    %9 = arith.subf %5, %8 : vector<16x1xf32>
    %cst_3 = arith.constant 3.100000e+01 : f32
    %10 = vector.broadcast %cst_3 : f32 to vector<16x1xf32>
    %11 = arith.divf %9, %10 : vector<16x1xf32>
    %cst_4 = arith.constant 0.000000e+00 : f32
    %12 = vector.broadcast %cst_4 : f32 to vector<16x1xf32>
    %13 = arith.maximumf %11, %12 : vector<16x1xf32>
    %14 = math.sqrt %13 : vector<16x1xf32>
    %cst_5 = arith.constant 9.99999997E-7 : f32
    %15 = vector.broadcast %cst_5 : f32 to vector<16x1xf32>
    %16 = arith.addf %14, %15 : vector<16x1xf32>
    %17 = tpu.reciprocal %16 : vector<16x1xf32> -> vector<16x1xf32>
    %c0_6 = arith.constant 0 : index
    %18 = memref.load %arg1[%c0_6] : memref<1xf32, #tpu.memory_space<smem>>
    %c0_7 = arith.constant 0 : index
    %19 = memref.load %arg2[%c0_7] : memref<1xf32, #tpu.memory_space<smem>>
    %20 = vector.broadcast %18 : f32 to vector<16x1xf32>
    %21 = arith.mulf %20, %17 : vector<16x1xf32>
    %22 = arith.mulf %7, %21 : vector<16x1xf32>
    %23 = vector.broadcast %19 : f32 to vector<16x1xf32>
    %24 = arith.subf %23, %22 : vector<16x1xf32>
    %25 = vector.broadcast %21 : vector<16x1xf32> to vector<16x32xf32>
    %26 = arith.mulf %0, %25 : vector<16x32xf32>
    %27 = vector.broadcast %24 : vector<16x1xf32> to vector<16x32xf32>
    %28 = arith.addf %26, %27 : vector<16x32xf32>
    %c0_8 = arith.constant 0 : index
    %c0_9 = arith.constant 0 : index
    %29 = vector.load %arg4[%c0_8, %c0_9] : memref<16x32xf32, #tpu.memory_space<vmem>>, vector<16x32xf32>
    tpu.vector_store %arg4[%c0_8, %c0_9], %28 {strides = array<i32>} : memref<16x32xf32, #tpu.memory_space<vmem>>, vector<16x32xf32>,
    return
  }
  func.func @transform_0(%arg0: i32) -> i32 {
    %c0_i32 = arith.constant 0 : i32
    %c0_i32_0 = arith.constant 0 : i32
    return %c0_i32 : i32
  }
  func.func @transform_1(%arg0: i32) -> i32 {
    %c0_i32 = arith.constant 0 : i32
    %c0_i32_0 = arith.constant 0 : i32
    return %c0_i32 : i32
  }
  func.func @transform_2(%arg0: i32) -> (i32, i32) {
    %c0_i32 = arith.constant 0 : i32
    %c0_i32_0 = arith.constant 0 : i32
    return %arg0, %c0_i32 : i32, i32
  }
  func.func @transform_3(%arg0: i32) -> (i32, i32) {
    %c0_i32 = arith.constant 0 : i32
    %c0_i32_0 = arith.constant 0 : i32
    return %arg0, %c0_i32 : i32, i32
  }
}

</mosaic_0001>

<bundles_post_ra>
// kernel: layer_norm_pallas.1
= control target key start
LH: loop header
LB: loop body
LE: loop exit
PB: predicated region body
PF: predicated region fallthrough
CT: control target
= control target key end

     0   :  { %10 = vsyncpa [#allocation5], 0  ;;  %s236_s0 = inlined_call_operand.<no memory space> [shape: f32[1], index: 0, kind: input, shape index: {}]   ;;  %s237_s1 = inlined_call_operand.<no memory space> [shape: f32[1], index: 1, kind: input, shape index: {}]   ;;  %s238_s2 = inlined_call_operand.hbm [shape: f32[16,32], index: 2, kind: input, shape index: {}]   ;;  %s239_s3 = inlined_call_operand.hbm [shape: f32[16,32], index: 3, kind: output, shape index: {}]  }
   0x1   :  { %11 = vsyncpa [#allocation6], 0  ;;  %s170_s12 = smov [#allocation4]   ;;  %s122_s16 = scalar_lea.hbm %s238_s2, 256 }
   0x2   :  { %s21_s13 = sshll.u32 %s170_s12, 4  ;;  %p123_p0 = scmp.ne.s32.totalorder %s238_s2, %s122_s16  ;;  %s22_s13 = int_to_ptr.vmem [resolvable:$true] %s21_s13 }
   0x3   :  { %p126_p1 = scmp.lt.u32.totalorder %s122_s16, %s238_s2 }
   0x5   :  { %p128_p2 = pnand %p126_p1, %p123_p0 }
   0x7   :  { %131 = shalt.err (!%p128_p2)
}
   0x8   :  { %s132_s21 = scalar_lea.vmem %s22_s13, 256  ;;  %p137_p4 = scmp.lt.s32.totalorder %s22_s13, %s22_s13 }
   0x9   :  { %p133_p3 = scmp.ne.s32.totalorder %s22_s13, %s132_s21  ;;  %p138_p5 = scmp.lt.s32.totalorder %s132_s21, %s132_s21 }
   0xb   :  { %p139_p6 = por %p138_p5, %p137_p4 }
   0xd   :  { %p140_p7 = pnand %p139_p6, %p133_p3 }
   0xf   :  { %143 = shalt.err (!%p140_p7)
}
  0x10   :  { %s171_s22 = smov 128   ;;  %s172_s23 = smov 8  }
  0x11   :  { %27 = dma.hbm_to_vmem [thread:$0]  %s238_s2, 256, %s22_s13, [#allocation5], %s171_s22, %s171_s22, %s172_s23  }
  0x12   :  { %166 = dma.done.wait [#allocation5], 256  }
  0x13   :  { %167 = vsyncadd [#allocation5], 4294967040  ;;  %vm33_vm0 = vcmask 261120   ;;  %v31_v0 = vld [vmem:[#allocation4] sm:$0xff]  ;;  %v32_v1 = vld [vmem:[#allocation4 + $0x8] sm:$0xff]  ;;  %v79_v34 = vstv %s236_s0  ;;  %v84_v37 = vstv %s237_s1  ;;  %s173_s29 = smov [#allocation7]  }
  0x14   :  { %v34_v2 = vsel %vm33_vm0, %v31_v0, 0.0  ;;  %v40_v3 = vmul.f32 %v31_v0, %v31_v0  ;;  %v41_v4 = vmul.f32 %v32_v1, %v32_v1  ;;  %v37_v6 = vsel %vm33_vm0, %v32_v1, 0.0  ;;  %s98_s30 = sshll.u32 %s173_s29, 4  ;;  %s99_s30 = int_to_ptr.vmem [resolvable:$true] %s98_s30 }
  0x15   :  { %35 = vadd.xlane.f32.xlu0 %v34_v2  ;;  %s144_s0 = scalar_lea.vmem %s99_s30, 256  ;;  %p149_p9 = scmp.lt.s32.totalorder %s99_s30, %s99_s30 }
  0x16   :  { %v42_v5 = vsel %vm33_vm0, %v40_v3, 0.0  ;;  %v45_v7 = vsel %vm33_vm0, %v41_v4, 0.0  ;;  %p145_p8 = scmp.ne.s32.totalorder %s99_s30, %s144_s0  ;;  %p150_p10 = scmp.lt.s32.totalorder %s144_s0, %s144_s0 }
  0x17   :  { %43 = vadd.xlane.f32.xlu1 %v42_v5 }
  0x18   :  { %p151_p11 = por %p150_p10, %p149_p9 }
  0x19   :  { %38 = vadd.xlane.f32.xlu0 %v37_v6 }
  0x1a   :  { %p152_p12 = pnand %p151_p11, %p145_p8 }
  0x1b   :  { %46 = vadd.xlane.f32.xlu1 %v45_v7 }
  0xa2   :  { %v36_v8 = vpop.xlane.xlu0 %35 }
  0xa3   :  { %v48_v9 = vmul.f32 0.03125, %v36_v8 }
  0xa4   :  { %v44_v10 = vpop.xlane.xlu1 %43 }
  0xa5   :  { %v50_v11 = vmul.f32 %v48_v9, %v36_v8 }
  0xa6   :  { %v39_v12 = vpop.xlane.xlu0 %38 }
  0xa7   :  { %v52_v13 = vsub.f32 %v44_v10, %v50_v11  ;;  %v49_v14 = vmul.f32 0.03125, %v39_v12 }
  0xa8   :  { %v47_v15 = vpop.xlane.xlu1 %46 }
  0xa9   :  { %v55_v16 = vmul.f32 0.032258064, %v52_v13  ;;  %v51_v17 = vmul.f32 %v49_v14, %v39_v12 }
  0xab   :  { %v57_v18 = vmax.f32 %v55_v16, 0.0  ;;  %v53_v19 = vsub.f32 %v47_v15, %v51_v17 }
  0xad   :  { %114 = vrsqrt.f32 %v57_v18  ;;  %v56_v20 = vmul.f32 0.032258064, %v53_v19  ;;  %vm61_vm1 = vcmp.eq.f32.partialorder %v57_v18, inf  ;;  %v64_v24 = vand.u32 2147483648, %v57_v18 }
  0xae   :  { %vm63_vm2 = vcmp.eq.f32.partialorder %v57_v18, 0.0 }
  0xaf   :  { %v58_v21 = vmax.f32 %v56_v20, 0.0 }
  0xb1   :  { %116 = vrsqrt.f32 %v58_v21  ;;  %vm68_vm3 = vcmp.eq.f32.partialorder %v58_v21, inf  ;;  %v71_v30 = vand.u32 2147483648, %v58_v21  ;;  %vm70_vm4 = vcmp.eq.f32.partialorder %v58_v21, 0.0 }
  0xb7   :  { %v115_v22 = vpop.eup %114 }
  0xb8   :  { %v60_v23 = vmul.f32 %v115_v22, %v57_v18 }
  0xba   :  { %v62_v25 = vsel %vm61_vm1, %v57_v18, %v60_v23 }
  0xbb   :  { %v65_v26 = vsel %vm63_vm2, %v64_v24, %v62_v25  ;;  %v117_v27 = vpop.eup %116 }
  0xbc   :  { %v73_v28 = vadd.f32 1e-06, %v65_v26  ;;  %v67_v29 = vmul.f32 %v117_v27, %v58_v21 }
  0xbe   :  { %118 = vrcp.f32 %v73_v28  ;;  %v69_v31 = vsel %vm68_vm3, %v58_v21, %v67_v29 }
  0xbf   :  { %v72_v32 = vsel %vm70_vm4, %v71_v30, %v69_v31 }
  0xc0   :  { %v74_v33 = vadd.f32 1e-06, %v72_v32 }
  0xc2   :  { %120 = vrcp.f32 %v74_v33 }
  0xc8   :  { %v119_v35 = vpop.eup %118 }
  0xc9   :  { %v80_v36 = vmul.f32 %v119_v35, %v79_v34 }
  0xcb   :  { %v82_v38 = vmul.f32 %v80_v36, %v48_v9  ;;  %v87_v41 = vmul.f32 %v80_v36, %v31_v0 }
  0xcc   :  { %v121_v39 = vpop.eup %120 }
  0xcd   :  { %v85_v40 = vsub.f32 %v84_v37, %v82_v38  ;;  %v81_v42 = vmul.f32 %v121_v39, %v79_v34 }
  0xcf   :  { %v89_v43 = vadd.f32 %v87_v41, %v85_v40  ;;  %v83_v44 = vmul.f32 %v81_v42, %v49_v14  ;;  %v88_v46 = vmul.f32 %v81_v42, %v32_v1 }
  0xd1   :  { %91 = vst.msk [vmem:[#allocation7] sm:$0xff] %vm33_vm0, %v89_v43  ;;  %v86_v45 = vsub.f32 %v84_v37, %v83_v44 }
  0xd3   :  { %v90_v47 = vadd.f32 %v88_v46, %v86_v45 }
  0xd5   :  { %92 = vst.msk [vmem:[#allocation7 + $0x8] sm:$0xff] %vm33_vm0, %v90_v47 }
  0xd6   :  { %155 = shalt.err (!%p152_p12)
}
  0xd7   :  { %s156_s5 = scalar_lea.hbm %s239_s3, 256 }
  0xd8   :  { %p157_p13 = scmp.ne.s32.totalorder %s239_s3, %s156_s5  ;;  %p160_p0 = scmp.lt.u32.totalorder %s156_s5, %s239_s3 }
  0xda   :  { %p162_p1 = pnand %p160_p0, %p157_p13 }
  0xdc   :  { %165 = shalt.err (!%p162_p1)
}
  0xdd   :  { %104 = dma.vmem_to_hbm [thread:$0]  %s99_s30, 256, %s239_s3, [#allocation6], %s171_s22, %s171_s22, %s172_s23  }
  0xde   :  { %168 = dma.done.wait [#allocation6], 256  }
  0xdf   :  { %169 = vsyncadd [#allocation6], 4294967040 }
  0xe0   :  { %108 = vsyncpa [#allocation5], 1 }
  0xe1   :  { %109 = vsyncpa [#allocation6], 1 }

</bundles_post_ra>
